<compile_context>
chip_gen: v6e
topology: v6e:2x2x1
jax: 0.10.0
libtpu: 0.0.40
codegen_flags: <defaults>
</compile_context>

<pallas_src>
import functools

import jax
import jax.numpy as jnp
from jax.experimental import pallas as pl
from jax.experimental.pallas import tpu as pltpu

LANE = 128
SUBLANE = 8


def _round_up(x: int, m: int) -> int:
    return (x + m - 1) // m * m


def fc_relu_kernel(x_ref, w1_ref, b1_ref, w2_ref, b2_ref, o_ref):
    # fc1 + relu1 (f32 accumulation on the MXU)
    h = jnp.dot(x_ref[...], w1_ref[...], preferred_element_type=jnp.float32)
    h = jnp.maximum(h + b1_ref[...], 0.0)
    # fc2 + relu2 — hidden stays in VMEM / vregs, never round-trips to HBM.
    h = h.astype(w2_ref.dtype)
    y = jnp.dot(h, w2_ref[...], preferred_element_type=jnp.float32)
    y = jnp.maximum(y + b2_ref[...], 0.0)
    o_ref[...] = y.astype(o_ref.dtype)


def prepare_params(w1, b1, w2, b2, compute_dtype=jnp.float32):
    """One-time prep: torch-layout params -> kernel layout.

    w1: [in, in], b1: [in], w2: [out, in], b2: [out]  (torch nn.Linear layout)
    Returns (w1_t [in,in], b1_r [1,in], w2_t [in,out_pad], b2_r [1,out_pad], out_f).
    out features are zero-padded to a multiple of 128 for lane-dense stores.
    """
    in_f = w1.shape[0]
    out_f = w2.shape[0]
    out_pad = _round_up(out_f, LANE)

    w1_t = jnp.asarray(w1, compute_dtype).T                       # [in, in]
    b1_r = jnp.asarray(b1, jnp.float32).reshape(1, in_f)          # [1, in]

    w2_t = jnp.zeros((in_f, out_pad), compute_dtype)
    w2_t = w2_t.at[:, :out_f].set(jnp.asarray(w2, compute_dtype).T)   # [in, out_pad]
    b2_r = jnp.zeros((1, out_pad), jnp.float32)
    b2_r = b2_r.at[:, :out_f].set(jnp.asarray(b2, jnp.float32))       # [1, out_pad]

    return w1_t, b1_r, w2_t, b2_r, out_f


@functools.partial(jax.jit, static_argnames=("out_f", "block_b"))
def fc_relu_apply(x, w1_t, b1_r, w2_t, b2_r, *, out_f, block_b=512):
    """x: [B, in] f32. Returns relu(relu(x@W1+b1)@W2+b2): [B, out_f]."""
    B, in_f = x.shape
    out_pad = w2_t.shape[1]
    compute_dtype = w1_t.dtype

    # Batch tile: multiple of 8 sublanes, capped so VMEM stays comfortable
    # even on v7x (64 MiB physical / 32 MiB default scoped).
    tB = min(block_b, _round_up(B, SUBLANE))
    B_pad = _round_up(B, tB)

    x_p = x.astype(compute_dtype)
    if B_pad != B:
        x_p = jnp.pad(x_p, ((0, B_pad - B), (0, 0)))

    grid = (B_pad // tB,)

    out_padded = pl.pallas_call(
        fc_relu_kernel,
        out_shape=jax.ShapeDtypeStruct((B_pad, out_pad), x.dtype),
        grid=grid,
        in_specs=[
            # x: tiled over batch, full (small) feature dim.
            pl.BlockSpec((tB, in_f), lambda i: (i, 0)),
            # Weights / biases: constant index_map -> fetched once, VMEM-resident.
            pl.BlockSpec((in_f, in_f), lambda i: (0, 0)),
            pl.BlockSpec((1, in_f), lambda i: (0, 0)),
            pl.BlockSpec((in_f, out_pad), lambda i: (0, 0)),
            pl.BlockSpec((1, out_pad), lambda i: (0, 0)),
        ],
        # Lane-dense output block (out_pad is a multiple of 128).
        out_specs=pl.BlockSpec((tB, out_pad), lambda i: (i, 0)),
        compiler_params=pltpu.CompilerParams(
            dimension_semantics=("parallel",),  # shard batch tiles across TCs (v7x)
        ),
    )(x_p, w1_t, b1_r, w2_t, b2_r)

    # Strip batch + lane padding (fused into the same jit).
    return out_padded[:B, :out_f]


def reference(x, w1, b1, w2, b2):
    h = jnp.maximum(x @ w1.T + b1, 0.0)
    return jnp.maximum(h @ w2.T + b2, 0.0)


if __name__ == "__main__":
    # Small shapes consistent with the module: batch=8, in_features=32, out_features=16.
    B, IN_F, OUT_F = 8, 32, 16

    key = jax.random.PRNGKey(0)
    kx, kw1, kb1, kw2, kb2 = jax.random.split(key, 5)

    x = jax.random.normal(kx, (B, IN_F), dtype=jnp.float32)

    # Deterministic nn.Linear-like uniform init.
    bound = 1.0 / (IN_F ** 0.5)
    w1 = jax.random.uniform(kw1, (IN_F, IN_F), jnp.float32, -bound, bound)
    b1 = jax.random.uniform(kb1, (IN_F,), jnp.float32, -bound, bound)
    w2 = jax.random.uniform(kw2, (OUT_F, IN_F), jnp.float32, -bound, bound)
    b2 = jax.random.uniform(kb2, (OUT_F,), jnp.float32, -bound, bound)

    # One-time parameter prep (analogous to storing weights pre-transposed).
    # For v6e/v7x MXU throughput you may pass compute_dtype=jnp.bfloat16 here.
    w1_t, b1_r, w2_t, b2_r, out_f = prepare_params(w1, b1, w2, b2)

    out = fc_relu_apply(x, w1_t, b1_r, w2_t, b2_r, out_f=out_f)
    jax.block_until_ready(out)

    ref = reference(x, w1, b1, w2, b2)
    assert out.shape == (B, OUT_F), out.shape
    assert jnp.allclose(out, ref, atol=1e-5, rtol=1e-5), "mismatch vs reference"

    print("KERNEL_OK")
</pallas_src>

<mosaic_0001>
module attributes {stable_mosaic.version = 11 : i64} {
  func.func @fc_relu_kernel(%arg0: i32, %arg1: memref<8x32xf32, #tpu.memory_space<vmem>>, %arg2: memref<32x32xf32, #tpu.memory_space<vmem>>, %arg3: memref<1x32xf32, #tpu.memory_space<vmem>>, %arg4: memref<32x128xf32, #tpu.memory_space<vmem>>, %arg5: memref<1x128xf32, #tpu.memory_space<vmem>>, %arg6: memref<8x128xf32, #tpu.memory_space<vmem>>) attributes {dimension_semantics = [#tpu.dimension_semantics<parallel>], iteration_bounds = array<i64: 1>, scalar_prefetch = 0 : i64, scratch_operands = 0 : i64, tpu.core_type = #tpu.core_type<tc>, window_params = [{transform_indices = @transform_0, window_bounds = array<i64: 8, 32>}, {pipeline_mode = #tpu.pipeline_mode<synchronous>, transform_indices = @transform_1, window_bounds = array<i64: 32, 32>}, {pipeline_mode = #tpu.pipeline_mode<synchronous>, transform_indices = @transform_2, window_bounds = array<i64: 1, 32>}, {pipeline_mode = #tpu.pipeline_mode<synchronous>, transform_indices = @transform_3, window_bounds = array<i64: 32, 128>}, {pipeline_mode = #tpu.pipeline_mode<synchronous>, transform_indices = @transform_4, window_bounds = array<i64: 1, 128>}, {transform_indices = @transform_5, window_bounds = array<i64: 8, 128>}]} {
    %c0 = arith.constant 0 : index
    %c0_0 = arith.constant 0 : index
    %0 = vector.load %arg1[%c0, %c0_0] : memref<8x32xf32, #tpu.memory_space<vmem>>, vector<8x32xf32>
    %c0_1 = arith.constant 0 : index
    %c0_2 = arith.constant 0 : index
    %1 = vector.load %arg2[%c0_1, %c0_2] : memref<32x32xf32, #tpu.memory_space<vmem>>, vector<32x32xf32>
    %cst = arith.constant dense<0.000000e+00> : vector<8x32xf32>
    %2 = tpu.matmul %0, %1, %cst {dimension_numbers = #tpu.dot_dimension_numbers<[1], [0], [0], [1], [0, 0, 1, 1], [], []>} : vector<8x32xf32>, vector<32x32xf32>, vector<8x32xf32> -> vector<8x32xf32>
    %c0_3 = arith.constant 0 : index
    %c0_4 = arith.constant 0 : index
    %3 = vector.load %arg3[%c0_3, %c0_4] : memref<1x32xf32, #tpu.memory_space<vmem>>, vector<1x32xf32>
    %4 = vector.broadcast %3 : vector<1x32xf32> to vector<8x32xf32>
    %5 = arith.addf %2, %4 : vector<8x32xf32>
    %cst_5 = arith.constant 0.000000e+00 : f32
    %6 = vector.broadcast %cst_5 : f32 to vector<8x32xf32>
    %7 = arith.maximumf %5, %6 : vector<8x32xf32>
    %c0_6 = arith.constant 0 : index
    %c0_7 = arith.constant 0 : index
    %8 = vector.load %arg4[%c0_6, %c0_7] : memref<32x128xf32, #tpu.memory_space<vmem>>, vector<32x128xf32>
    %cst_8 = arith.constant dense<0.000000e+00> : vector<8x128xf32>
    %9 = tpu.matmul %7, %8, %cst_8 {dimension_numbers = #tpu.dot_dimension_numbers<[1], [0], [0], [1], [0, 0, 1, 1], [], []>} : vector<8x32xf32>, vector<32x128xf32>, vector<8x128xf32> -> vector<8x128xf32>
    %c0_9 = arith.constant 0 : index
    %c0_10 = arith.constant 0 : index
    %10 = vector.load %arg5[%c0_9, %c0_10] : memref<1x128xf32, #tpu.memory_space<vmem>>, vector<1x128xf32>
    %11 = vector.broadcast %10 : vector<1x128xf32> to vector<8x128xf32>
    %12 = arith.addf %9, %11 : vector<8x128xf32>
    %cst_11 = arith.constant 0.000000e+00 : f32
    %13 = vector.broadcast %cst_11 : f32 to vector<8x128xf32>
    %14 = arith.maximumf %12, %13 : vector<8x128xf32>
    %c0_12 = arith.constant 0 : index
    %c0_13 = arith.constant 0 : index
    %15 = vector.load %arg6[%c0_12, %c0_13] : memref<8x128xf32, #tpu.memory_space<vmem>>, vector<8x128xf32>
    tpu.vector_store %arg6[%c0_12, %c0_13], %14 {strides = array<i32>} : memref<8x128xf32, #tpu.memory_space<vmem>>, vector<8x128xf32>,
    return
  }
  func.func @transform_0(%arg0: i32) -> (i32, i32) {
    %c0_i32 = arith.constant 0 : i32
    %c0_i32_0 = arith.constant 0 : i32
    return %arg0, %c0_i32 : i32, i32
  }
  func.func @transform_1(%arg0: i32) -> (i32, i32) {
    %c0_i32 = arith.constant 0 : i32
    %c0_i32_0 = arith.constant 0 : i32
    %c0_i32_1 = arith.constant 0 : i32
    return %c0_i32, %c0_i32_0 : i32, i32
  }
  func.func @transform_2(%arg0: i32) -> (i32, i32) {
    %c0_i32 = arith.constant 0 : i32
    %c0_i32_0 = arith.constant 0 : i32
    %c0_i32_1 = arith.constant 0 : i32
    return %c0_i32, %c0_i32_0 : i32, i32
  }
  func.func @transform_3(%arg0: i32) -> (i32, i32) {
    %c0_i32 = arith.constant 0 : i32
    %c0_i32_0 = arith.constant 0 : i32
    %c0_i32_1 = arith.constant 0 : i32
    return %c0_i32, %c0_i32_0 : i32, i32
  }
  func.func @transform_4(%arg0: i32) -> (i32, i32) {
    %c0_i32 = arith.constant 0 : i32
    %c0_i32_0 = arith.constant 0 : i32
    %c0_i32_1 = arith.constant 0 : i32
    return %c0_i32, %c0_i32_0 : i32, i32
  }
  func.func @transform_5(%arg0: i32) -> (i32, i32) {
    %c0_i32 = arith.constant 0 : i32
    %c0_i32_0 = arith.constant 0 : i32
    return %arg0, %c0_i32 : i32, i32
  }
}

</mosaic_0001>

<bundles_post_ra>
// kernel: fc_relu_apply.1
= control target key start
LH: loop header
LB: loop body
LE: loop exit
PB: predicated region body
PF: predicated region fallthrough
CT: control target
= control target key end

     0   :  { %10 = vsyncpa [#allocation3], 0  ;;  %s437_s0 = inlined_call_operand.hbm [shape: f32[8,32], index: 0, kind: input, shape index: {}]   ;;  %s438_s1 = inlined_call_operand.hbm [shape: f32[32,32], index: 1, kind: input, shape index: {}]   ;;  %s439_s2 = inlined_call_operand.vmem [shape: f32[1,32], index: 2, kind: input, shape index: {}]   ;;  %s440_s3 = inlined_call_operand.hbm [shape: f32[32,128], index: 3, kind: input, shape index: {}]   ;;  %s441_s4 = inlined_call_operand.vmem [shape: f32[1,128], index: 4, kind: input, shape index: {}]   ;;  %s442_s5 = inlined_call_operand.hbm [shape: f32[8,128], index: 5, kind: output, shape index: {}]  }
   0x1   :  { %11 = vsyncpa [#allocation6], 0 }
   0x2   :  { %12 = vsyncpa [#allocation4], 0  ;;  %s379_s18 = smov [#allocation5]  }
   0x3   :  { %s28_s19 = sshll.u32 %s379_s18, 4  ;;  %s29_s19 = int_to_ptr.vmem [resolvable:$true] %s28_s19 }
   0x4   :  { %s301_s20 = scalar_lea.vmem %s29_s19, 512  ;;  %p306_p1 = scmp.lt.s32.totalorder %s29_s19, %s29_s19 }
   0x5   :  { %p302_p0 = scmp.ne.s32.totalorder %s29_s19, %s301_s20  ;;  %p307_p2 = scmp.lt.s32.totalorder %s301_s20, %s301_s20 }
   0x7   :  { %p308_p3 = por %p307_p2, %p306_p1 }
   0x9   :  { %p309_p4 = pnand %p308_p3, %p302_p0 }
   0xb   :  { %312 = shalt.err (!%p309_p4)
}
   0xc   :  { %s380_s21 = smov 128   ;;  %s381_s22 = smov 8  }
   0xd   :  { %34 = dma.hbm_to_vmem [thread:$0]  %s438_s1, 512, %s29_s19, [#allocation6], %s380_s21, %s380_s21, %s381_s22  }
   0xe   :  { %s382_s25 = smov [#allocation2]   ;;  %s383_s27 = smov [#allocation7]  }
   0xf   :  { %s19_s26 = sshll.u32 %s382_s25, 4  ;;  %s42_s28 = sshll.u32 %s383_s27, 4  ;;  %s20_s26 = int_to_ptr.vmem [resolvable:$true] %s19_s26  ;;  %s43_s28 = int_to_ptr.vmem [resolvable:$true] %s42_s28 }
  0x10   :  { %s321_s29 = scalar_lea.vmem %s20_s26, 128  ;;  %p326_p6 = scmp.lt.s32.totalorder %s20_s26, %s20_s26 }
  0x11   :  { %p322_p5 = scmp.ne.s32.totalorder %s20_s26, %s321_s29  ;;  %p327_p7 = scmp.lt.s32.totalorder %s321_s29, %s321_s29 }
  0x13   :  { %p328_p8 = por %p327_p7, %p326_p6 }
  0x15   :  { %p329_p9 = pnand %p328_p8, %p322_p5 }
  0x17   :  { %332 = shalt.err (!%p329_p9)
}
  0x18   :  { %22 = dma.hbm_to_vmem [thread:$0]  %s437_s0, 128, %s20_s26, [#allocation3]  }
  0x19   :  { %s341_s7 = scalar_lea.vmem %s43_s28, 512  ;;  %p346_p11 = scmp.lt.s32.totalorder %s43_s28, %s43_s28 }
  0x1a   :  { %p342_p10 = scmp.ne.s32.totalorder %s43_s28, %s341_s7  ;;  %p347_p12 = scmp.lt.s32.totalorder %s341_s7, %s341_s7 }
  0x1c   :  { %p348_p13 = por %p347_p12, %p346_p11 }
  0x1e   :  { %p349_p0 = pnand %p348_p13, %p342_p10 }
  0x20   :  { %352 = shalt.err (!%p349_p0)
}
  0x21   :  { %48 = dma.hbm_to_vmem [thread:$0]  %s440_s3, 512, %s43_s28, [#allocation6], %s380_s21, %s380_s21, %s381_s22  }
  0x22   :  { %373 = dma.done.wait [#allocation3], 128  }
  0x23   :  { %374 = vsyncadd [#allocation3], 4294967168 }
  0x24   :  { %375 = dma.done.wait [#allocation6], 1024  }
  0x25   :  { %376 = vsyncadd [#allocation6], 4294966272  ;;  %v384_v0 = vmov 0.0   ;;  %vm385_vm0 = vmmov 0   ;;  %v64_v1 = vld [vmem:[#allocation5 + $0x18] sm:$0xff]  ;;  %v63_v2 = vld [vmem:[#allocation5 + $0x10] sm:$0xff] }
  0x26   :  { %263 = vmatprep.subr.mxu0 %v384_v0  ;;  %271 = vmatprep.mubr.msk.f32.mxu0 %vm385_vm0, %v384_v0  ;;  %v150_v3 = vld [vmem:[#allocation7 + $0x18] sm:$0xff]  ;;  %v62_v4 = vld [vmem:[#allocation5 + $0x8] sm:$0xff]  ;;  %v61_v5 = vld [vmem:[#allocation5] sm:$0xff]  ;;  %vm72_vm1 = vcmask 261120   ;;  %s386_s11 = smov [#allocation8]  }
  0x27   :  { %274 = vmatprep.subr.mxu1 %v384_v0  ;;  %282 = vmatprep.mubr.msk.f32.mxu1 %vm385_vm0, %v384_v0  ;;  %v60_v6 = vld [vmem:[#allocation2] sm:$0xff]  ;;  %v149_v7 = vld [vmem:[#allocation7 + $0x10] sm:$0xff]  ;;  %v148_v8 = vld [vmem:[#allocation7 + $0x8] sm:$0xff]  ;;  %s239_s12 = sshll.u32 %s386_s11, 4  ;;  %s240_s12 = int_to_ptr.vmem [resolvable:$true] %s239_s12 }
  0x28   :  { %264 = vmatpush3.msra.mxu0 %v64_v1  ;;  %275 = vmatpush3.msra.mxu1 %v150_v3  ;;  %v147_v9 = vld [vmem:[#allocation7] sm:$0xff]  ;;  %v249_v10 = vld [vmem:[%s439_s2] ss:$0 sm:$0xff]  ;;  %s353_s13 = scalar_lea.vmem %s240_s12, 128  ;;  %p358_p2 = scmp.lt.s32.totalorder %s240_s12, %s240_s12 }
  0x29   :  { %265 = vmatprep.subr.mxu0 %v384_v0  ;;  %276 = vmatprep.subr.mxu1 %v384_v0  ;;  %v251_v15 = vld [vmem:[%s441_s4] ss:$0 sm:$0xff]  ;;  %p354_p1 = scmp.ne.s32.totalorder %s240_s12, %s353_s13  ;;  %p359_p3 = scmp.lt.s32.totalorder %s353_s13, %s353_s13 }
  0x2a   :  { %266 = vmatpush3.msra.mxu0 %v63_v2  ;;  %277 = vmatpush3.msra.mxu1 %v149_v7 }
  0x2b   :  { %267 = vmatprep.subr.mxu0 %v384_v0  ;;  %278 = vmatprep.subr.mxu1 %v384_v0  ;;  %p360_p4 = por %p359_p3, %p358_p2 }
  0x2c   :  { %268 = vmatpush3.msra.mxu0 %v62_v4  ;;  %279 = vmatpush3.msra.mxu1 %v148_v8 }
  0x2d   :  { %269 = vmatprep.subr.mxu0 %v384_v0  ;;  %280 = vmatprep.subr.mxu1 %v384_v0  ;;  %p361_p5 = pnand %p360_p4, %p354_p1 }
  0x2e   :  { %270 = vmatpush3.msra.mxu0 %v61_v5  ;;  %281 = vmatpush3.msra.mxu1 %v147_v9 }
  0x2f   :  { %272 = vmatmul.mubr.msk.f32.vlgmr.msra.gmra.mxu0 %vm72_vm1, %v60_v6 }
  0xef   :  { %v142_v11 = vpop.f32.mrf.mxu0 }
  0xf0   :  { %v143_v12 = vadd.f32 %v249_v10, %v142_v11 }
  0xf1   :  { %v273_v13 = vpop.f32.mrf.mxu0 }
  0xf2   :  { %v146_v14 = vmax.f32 %v143_v12, 0.0 }
  0xf4   :  { %283 = vmatmul.mubr.msk.f32.vlgmr.msra.gmra.mxu1 %vm72_vm1, %v146_v14 }
 0x1b4   :  { %v227_v16 = vpop.f32.mrf.mxu1 }
 0x1b5   :  { %v228_v17 = vadd.f32 %v251_v15, %v227_v16 }
 0x1b6   :  { %v284_v18 = vpop.f32.mrf.mxu1 }
 0x1b7   :  { %v231_v19 = vmax.f32 %v228_v17, 0.0 }
 0x1b9   :  { %232 = vst [vmem:[#allocation8] sm:$0xff] %v231_v19 }
 0x1ba   :  { %364 = shalt.err (!%p361_p5)
}
 0x1bb   :  { %242 = dma.vmem_to_hbm [thread:$0]  %s240_s12, 128, %s442_s5, [#allocation4]  }
 0x1bc   :  { %377 = dma.done.wait [#allocation4], 128  }
 0x1bd   :  { %378 = vsyncadd [#allocation4], 4294967168 }
 0x1be   :  { %246 = vsyncpa [#allocation3], 1 }
 0x1bf   :  { %247 = vsyncpa [#allocation6], 1 }
 0x1c0   :  { %248 = vsyncpa [#allocation4], 1 }

</bundles_post_ra>
